<compile_context>
chip_gen: v7x
topology: tpu7x:2x2x1
jax: 0.10.0
libtpu: 0.0.40
codegen_flags: <defaults>
</compile_context>

<pallas_src>
import functools

import jax
import jax.numpy as jnp
from jax.experimental import pallas as pl
from jax.experimental.pallas import tpu as pltpu


def _asy_loss_kernel(t_ref, u_ref, v_ref, out_ref, *, beta, num_train):
    u = u_ref[...]                                   # (B, K), native dtype
    v = v_ref[...]                                   # (B, K), native dtype
    B = u.shape[0]

    # --- pairwise label equality from the single (B,1) int input ------------
    t_col = t_ref[...].astype(jnp.float32)           # (B, 1), exact for ints
    ones = jnp.ones_like(t_col)                      # (B, 1)
    # Row broadcast t_row[i, j] = t[j] via a K=1 outer product on the MXU.
    t_row = jax.lax.dot_general(
        ones, t_col, (((1,), (1,)), ((), ())),
        preferred_element_type=jnp.float32)          # (B, B)
    # |.| < 0.5 is an exact equality test for integer-valued labels and is
    # robust to any MXU rounding.
    sim = (jnp.abs(t_row - t_col) < 0.5).astype(jnp.float32)   # (B, B)

    # --- theta = u @ u.T / 2, f32 accumulation on the MXU --------------------
    theta = jax.lax.dot_general(
        u, u, (((1,), (1,)), ((), ())),
        preferred_element_type=jnp.float32) * 0.5    # (B, B) f32

    # Numerically stable softplus: log(1 + exp(theta)).
    softplus = jnp.maximum(theta, 0.0) + jnp.log(1.0 + jnp.exp(-jnp.abs(theta)))
    pair_loss = softplus - sim * theta

    # Positive / negative pair counts from a single reduction of sim.
    sum_sim = jnp.sum(sim)                           # includes diagonal (== B)
    s1 = sum_sim - float(B)
    s0 = float(B * B) - sum_sim
    s0 = jnp.where(s0 == 0.0, 1.0, s0)
    s1 = jnp.where(s1 == 0.0, 1.0, s1)
    s = s0 + s1
    pos_scale = s / s1
    neg_scale = s / s0
    # Fused select: one FMA instead of compare + select per element.
    scale = neg_scale + sim * (pos_scale - neg_scale)

    # Exact diagonal removal via iota mask (matches the reference's
    # pair_loss - diag(diag(pair_loss)) bit-for-bit in structure).
    rows = jax.lax.broadcasted_iota(jnp.int32, (B, B), 0)
    cols = jax.lax.broadcasted_iota(jnp.int32, (B, B), 1)
    off_diag = rows != cols
    scaled_sum = jnp.sum(jnp.where(off_diag, pair_loss * scale, 0.0))

    count = B * (B - 1) / 2.0
    similarity_loss = scaled_sum * (0.5 / count)     # (sum / 2) / count

    # Constraint term; upcast only here (no-op when inputs are already f32).
    diff = v.astype(jnp.float32) - u.astype(jnp.float32)
    constraint_sum = jnp.sum(diff * diff)

    inv_norm = 1.0 / (num_train * B)                 # trace-time constant
    out_ref[0, 0] = (similarity_loss + beta * constraint_sum) * inv_norm


def asy_loss(u, v_omega, target, num_class, *, beta, num_train):
    """Pallas implementation of AsyLoss.forward.

    `num_class` is kept for API parity with the PyTorch module; label equality
    is compared directly on the int targets inside the kernel.
    """
    del num_class
    B = u.shape[0]

    # Single label input; no dtype casts of u / v_omega in the wrapper.
    t_col = target.astype(jnp.int32).reshape(B, 1)

    kernel = functools.partial(
        _asy_loss_kernel, beta=float(beta), num_train=float(num_train))

    out = pl.pallas_call(
        kernel,
        out_shape=jax.ShapeDtypeStruct((1, 1), jnp.float32),
        in_specs=[
            pl.BlockSpec(memory_space=pltpu.MemorySpace.VMEM),   # targets (B,1)
            pl.BlockSpec(memory_space=pltpu.MemorySpace.VMEM),   # u       (B,K)
            pl.BlockSpec(memory_space=pltpu.MemorySpace.VMEM),   # V_omega (B,K)
        ],
        out_specs=pl.BlockSpec(memory_space=pltpu.MemorySpace.SMEM),
    )(t_col, u, v_omega)
    return out[0, 0]


def asy_loss_ref(u, v_omega, target, num_class, *, beta, num_train):
    """Pure-JAX reference mirroring the PyTorch forward (all-f32, exact dots)."""
    u = u.astype(jnp.float32)
    v_omega = v_omega.astype(jnp.float32)
    B = u.shape[0]
    theta = jnp.dot(u, u.T, precision=jax.lax.Precision.HIGHEST) / 2.0
    oh = jax.nn.one_hot(target, num_class, dtype=jnp.float32)
    sim = (jnp.dot(oh, oh.T, precision=jax.lax.Precision.HIGHEST) > 0).astype(jnp.float32)
    pair_loss = jnp.log(1.0 + jnp.exp(theta)) - sim * theta
    s1 = sim.sum() - B
    s0 = (1.0 - sim).sum()
    s0 = jnp.where(s0 == 0.0, 1.0, s0)
    s1 = jnp.where(s1 == 0.0, 1.0, s1)
    s = s0 + s1
    pair_loss = jnp.where(sim > 0.0, pair_loss * (s / s1), pair_loss * (s / s0))
    pair_loss = pair_loss - jnp.diag(jnp.diag(pair_loss))
    count = B * (B - 1) / 2.0
    sim_loss = pair_loss.sum() / 2.0 / count
    constraint = beta * (v_omega - u) ** 2
    return (sim_loss + constraint.sum()) / (num_train * B)


if __name__ == "__main__":
    key = jax.random.PRNGKey(0)
    k_u, k_v, k_t = jax.random.split(key, 3)

    batch_size = 8        # B
    code_length = 32      # K (hash code length)
    num_class = 4
    beta = 0.5
    num_train = 64

    u = jax.random.normal(k_u, (batch_size, code_length), dtype=jnp.float32)
    v_omega = jax.random.normal(k_v, (batch_size, code_length), dtype=jnp.float32)
    target = jax.random.randint(k_t, (batch_size,), 0, num_class, dtype=jnp.int32)

    loss = asy_loss(u, v_omega, target, num_class, beta=beta, num_train=num_train)
    loss = jax.block_until_ready(loss)

    loss_ref = asy_loss_ref(u, v_omega, target, num_class,
                            beta=beta, num_train=num_train)
    loss_ref = jax.block_until_ready(loss_ref)

    assert jnp.allclose(loss, loss_ref, rtol=1e-3, atol=1e-5), (loss, loss_ref)
    print("KERNEL_OK")
</pallas_src>

<mosaic_0001>
module attributes {stable_mosaic.version = 11 : i64} {
  func.func @_asy_loss_kernel(%arg0: memref<8x1xi32, #tpu.memory_space<vmem>>, %arg1: memref<8x32xf32, #tpu.memory_space<vmem>>, %arg2: memref<8x32xf32, #tpu.memory_space<vmem>>, %arg3: memref<1x1xf32, #tpu.memory_space<smem>>) attributes {dimension_semantics = [], scalar_prefetch = 0 : i64, scratch_operands = 0 : i64, tpu.core_type = #tpu.core_type<tc>} {
    %c0 = arith.constant 0 : index
    %c0_0 = arith.constant 0 : index
    %0 = vector.load %arg1[%c0, %c0_0] : memref<8x32xf32, #tpu.memory_space<vmem>>, vector<8x32xf32>
    %c0_1 = arith.constant 0 : index
    %c0_2 = arith.constant 0 : index
    %1 = vector.load %arg2[%c0_1, %c0_2] : memref<8x32xf32, #tpu.memory_space<vmem>>, vector<8x32xf32>
    %c0_3 = arith.constant 0 : index
    %c0_4 = arith.constant 0 : index
    %2 = vector.load %arg0[%c0_3, %c0_4] : memref<8x1xi32, #tpu.memory_space<vmem>>, vector<8x1xi32>
    %3 = arith.sitofp %2 : vector<8x1xi32> to vector<8x1xf32>
    %cst = arith.constant 1.000000e+00 : f32
    %4 = vector.broadcast %cst : f32 to vector<8x1xf32>
    %cst_5 = arith.constant dense<0.000000e+00> : vector<8x8xf32>
    %5 = tpu.matmul %4, %3, %cst_5 {dimension_numbers = #tpu.dot_dimension_numbers<[1], [1], [0], [0], [0, 0, 1, 0], [], []>} : vector<8x1xf32>, vector<8x1xf32>, vector<8x8xf32> -> vector<8x8xf32>
    %6 = vector.broadcast %3 : vector<8x1xf32> to vector<8x8xf32>
    %7 = arith.subf %5, %6 : vector<8x8xf32>
    %8 = math.absf %7 : vector<8x8xf32>
    %cst_6 = arith.constant 5.000000e-01 : f32
    %9 = vector.broadcast %cst_6 : f32 to vector<8x8xf32>
    %10 = arith.cmpf olt, %8, %9 : vector<8x8xf32>
    %11 = arith.extui %10 : vector<8x8xi1> to vector<8x8xi32>
    %12 = arith.sitofp %11 : vector<8x8xi32> to vector<8x8xf32>
    %cst_7 = arith.constant dense<0.000000e+00> : vector<8x8xf32>
    %13 = tpu.matmul %0, %0, %cst_7 {dimension_numbers = #tpu.dot_dimension_numbers<[1], [1], [0], [0], [0, 0, 1, 0], [], []>} : vector<8x32xf32>, vector<8x32xf32>, vector<8x8xf32> -> vector<8x8xf32>
    %cst_8 = arith.constant 5.000000e-01 : f32
    %14 = vector.broadcast %cst_8 : f32 to vector<8x8xf32>
    %15 = arith.mulf %13, %14 : vector<8x8xf32>
    %cst_9 = arith.constant 0.000000e+00 : f32
    %16 = vector.broadcast %cst_9 : f32 to vector<8x8xf32>
    %17 = arith.maximumf %15, %16 : vector<8x8xf32>
    %18 = math.absf %15 : vector<8x8xf32>
    %cst_10 = arith.constant 0.000000e+00 : f32
    %19 = vector.broadcast %cst_10 : f32 to vector<8x8xf32>
    %20 = arith.subf %19, %18 : vector<8x8xf32>
    %21 = math.exp %20 : vector<8x8xf32>
    %cst_11 = arith.constant 1.000000e+00 : f32
    %22 = vector.broadcast %cst_11 : f32 to vector<8x8xf32>
    %23 = arith.addf %22, %21 : vector<8x8xf32>
    %24 = math.log %23 : vector<8x8xf32>
    %25 = arith.addf %17, %24 : vector<8x8xf32>
    %26 = arith.mulf %12, %15 : vector<8x8xf32>
    %27 = arith.subf %25, %26 : vector<8x8xf32>
    %28 = vector.shape_cast %12 : vector<8x8xf32> to vector<1x8x8xf32>
    %cst_12 = arith.constant dense<0.000000e+00> : vector<1xf32>
    %29 = vector.multi_reduction <add>, %28, %cst_12 [1, 2] : vector<1x8x8xf32> to vector<1xf32>
    %30 = vector.shape_cast %29 : vector<1xf32> to vector<1x1x1xf32>
    %31 = vector.extract %30[0, 0, 0] : f32 from vector<1x1x1xf32>
    %cst_13 = arith.constant 8.000000e+00 : f32
    %32 = arith.subf %31, %cst_13 : f32
    %cst_14 = arith.constant 6.400000e+01 : f32
    %33 = arith.subf %cst_14, %31 : f32
    %cst_15 = arith.constant 0.000000e+00 : f32
    %34 = arith.cmpf oeq, %33, %cst_15 : f32
    %cst_16 = arith.constant 1.000000e+00 : f32
    %35 = arith.select %34, %cst_16, %33 : f32
    %cst_17 = arith.constant 0.000000e+00 : f32
    %36 = arith.cmpf oeq, %32, %cst_17 : f32
    %cst_18 = arith.constant 1.000000e+00 : f32
    %37 = arith.select %36, %cst_18, %32 : f32
    %38 = arith.addf %35, %37 : f32
    %39 = arith.divf %38, %37 : f32
    %40 = arith.divf %38, %35 : f32
    %41 = arith.subf %39, %40 : f32
    %42 = vector.broadcast %41 : f32 to vector<8x8xf32>
    %43 = arith.mulf %12, %42 : vector<8x8xf32>
    %44 = vector.broadcast %40 : f32 to vector<8x8xf32>
    %45 = arith.addf %44, %43 : vector<8x8xf32>
    %46 = tpu.iota {dimensions = array<i32: 0>} : vector<8x8xi32>
    %47 = tpu.iota {dimensions = array<i32: 1>} : vector<8x8xi32>
    %48 = arith.cmpi ne, %46, %47 : vector<8x8xi32>
    %49 = arith.mulf %27, %45 : vector<8x8xf32>
    %cst_19 = arith.constant 0.000000e+00 : f32
    %50 = vector.broadcast %cst_19 : f32 to vector<8x8xf32>
    %51 = arith.select %48, %49, %50 : vector<8x8xi1>, vector<8x8xf32>
    %52 = vector.shape_cast %51 : vector<8x8xf32> to vector<1x8x8xf32>
    %cst_20 = arith.constant dense<0.000000e+00> : vector<1xf32>
    %53 = vector.multi_reduction <add>, %52, %cst_20 [1, 2] : vector<1x8x8xf32> to vector<1xf32>
    %54 = vector.shape_cast %53 : vector<1xf32> to vector<1x1x1xf32>
    %55 = vector.extract %54[0, 0, 0] : f32 from vector<1x1x1xf32>
    %cst_21 = arith.constant 0.0178571437 : f32
    %56 = arith.mulf %55, %cst_21 : f32
    %57 = arith.subf %1, %0 : vector<8x32xf32>
    %58 = arith.mulf %57, %57 : vector<8x32xf32>
    %59 = vector.shape_cast %58 : vector<8x32xf32> to vector<1x8x32xf32>
    %cst_22 = arith.constant dense<0.000000e+00> : vector<1xf32>
    %60 = vector.multi_reduction <add>, %59, %cst_22 [1, 2] : vector<1x8x32xf32> to vector<1xf32>
    %61 = vector.shape_cast %60 : vector<1xf32> to vector<1x1x1xf32>
    %62 = vector.extract %61[0, 0, 0] : f32 from vector<1x1x1xf32>
    %cst_23 = arith.constant 5.000000e-01 : f32
    %63 = arith.mulf %cst_23, %62 : f32
    %64 = arith.addf %56, %63 : f32
    %cst_24 = arith.constant 0.001953125 : f32
    %65 = arith.mulf %64, %cst_24 : f32
    %c0_25 = arith.constant 0 : index
    %c0_26 = arith.constant 0 : index
    %66 = memref.load %arg3[%c0_25, %c0_26] : memref<1x1xf32, #tpu.memory_space<smem>>
    memref.store %65, %arg3[%c0_25, %c0_26] : memref<1x1xf32, #tpu.memory_space<smem>>
    return
  }
}

</mosaic_0001>

<bundles_post_ra>
// kernel: tpu_custom_call.1
= control target key start
LH: loop header
LB: loop body
LE: loop exit
PB: predicated region body
PF: predicated region fallthrough
CT: control target
= control target key end

     0   :  { %vm105_vm0 = vcmask 261120   ;;  %vm19_vm1 = vcmask 7168   ;;  %v326_v2 = vmov 0.0   ;;  %s384_s0 = inlined_call_operand.vmem [shape: s32[8,1], index: 0, kind: input, shape index: {}]   ;;  %s385_s1 = inlined_call_operand.vmem [shape: f32[8,32], index: 1, kind: input, shape index: {}]   ;;  %s386_s2 = inlined_call_operand.vmem [shape: f32[8,32], index: 2, kind: input, shape index: {}]   ;;  %s387_s3 = inlined_call_operand.hbm [shape: f32[1,1], index: 3, kind: output, shape index: {}]  }
   0x1   :  { %v354_v0 = vld [vmem:[%s385_s1] sm:$0xff]  ;;  %285 = vmatprep.subr.mxu1 %v326_v2  ;;  %280 = vmatprep.subr.mxu0 %v326_v2 }
   0x2   :  { %v17_v1 = vld [vmem:[%s384_s0] sm:$0xff] }
   0x3   :  { %v18_v3 = vcvt.s32.f32 %v17_v1 }
   0x4   :  { %8 = vsyncpa [#allocation3], 0  ;;  %286 = vmatpush3.xpose.msk.msra.mxu1 %vm105_vm0, %v354_v0  ;;  %vm327_vm2 = vmmov 0   ;;  %v328_v4 = vmov 0   ;;  %v329_v5 = vmov 1.0   ;;  %vm191_vm3 = vcmask 64512  }
   0x5   :  { %287 = vmatprep.mubr.msk.f32.mxu1 %vm327_vm2, %v326_v2  ;;  %281 = vmatpush3.xpose.msk.msra.mxu0 %vm19_vm1, %v18_v3  ;;  %v222_v35 = vlaneseq  ;;  %v16_v37 = vld [vmem:[%s386_s2] sm:$0xff]  ;;  %s314_s5 = scalar_lea.hbm %s387_s3, 16 }
   0x6   :  { %282 = vmatprep.mubr.msk.f32.mxu0 %vm327_vm2, %v326_v2  ;;  %305 = vset.pattern.permute.xlu0 %v328_v4  ;;  %v240_v44 = vsub.f32 %v16_v37, %v354_v0  ;;  %p315_p2 = scmp.ne.s32.totalorder %s387_s3, %s314_s5  ;;  %p318_p3 = scmp.lt.u32.totalorder %s314_s5, %s387_s3 }
   0x7   :  { %288 = vmatmul.mubr.msk.f32.vlgmr.msra.gmra.mrb[0].mxu1 %vm105_vm0, %v354_v0  ;;  %97 = vperm.xlu0 %305, %v18_v3   ;;  %v223_v39 = vshrl.u32 %v222_v35, 7  ;;  %v225_v40 = vand.u32 127, %v222_v35 }
   0x8   :  { %283 = vmatmul.mubr.msk.f32.vlgmr.msra.gmra.mrb[0].mxu0 %vm19_vm1, %v329_v5  ;;  %v241_v48 = vmul.f32 %v240_v44, %v240_v44  ;;  %p320_p4 = pnand %p318_p3, %p315_p2 }
   0x9   :  { %vm226_vm5 = vcmp.ne.s32.totalorder %v223_v39, %v225_v40 }
   0xa   :  { %v242_v51 = vsel %vm105_vm0, %v241_v48, 0.0 }
  0x86   :  { %v98_v6 = vpop.permute.xlu0 %97 }
  0xda   :  { %v175_v7 = vpop.f32.mrb[0].mxu1 }
  0xdb   :  { %v92_v8 = vpop.f32.mrb[0].mxu0  ;;  %v289_v9 = vpop.f32.mrb[1].mxu1  ;;  %v179_v26 = vmul.f32 0.5, %v175_v7 }
  0xdc   :  { %v100_v10 = vsub.f32 %v92_v8, %v98_v6  ;;  %v284_v11 = vpop.f32.mrb[1].mxu0 }
  0xdd   :  { %v181_v27 = vand.u32 2147483647, %v179_v26  ;;  %v180_v33 = vmax.f32 %v179_v26, 0.0 }
  0xde   :  { %v101_v12 = vand.u32 2147483647, %v100_v10 }
  0xdf   :  { %v182_v28 = vsub.f32 0.0, %v181_v27 }
  0xe0   :  { %vm102_vm4 = vcmp.lt.f32.partialorder %v101_v12, 0.5 }
  0xe1   :  { %v272_v13 = vsel %vm102_vm4, 1.0, %v326_v2  ;;  %v183_v29 = vmul.f32 1.442695, %v182_v28 }
  0xe2   :  { %v192_v14 = vsel %vm191_vm3, %v272_v13, 0.0  ;;  %v189_v41 = vmul.f32 %v272_v13, %v179_v26 }
  0xe3   :  { %193 = vadd.xlane.f32.xlu0 %v192_v14 }
 0x170   :  { %v194_v15 = vpop.xlane.xlu0 %193 }
 0x171   :  { %v195_v16 = vrot.slane %v194_v15, 4 }
 0x173   :  { %v196_v17 = vadd.f32 %v195_v16, %v194_v15 }
 0x175   :  { %v197_v18 = vrot.slane %v196_v17, 2 }
 0x177   :  { %v198_v19 = vadd.f32 %v197_v18, %v196_v17 }
 0x179   :  { %v199_v20 = vrot.slane %v198_v19, 1 }
 0x17b   :  { %v200_v21 = vadd.f32 %v199_v20, %v198_v19 }
 0x17d   :  { %290 = vpush %v200_v21 }
 0x1ae   :  { %s291_s0 = spop %290 }
 0x1af   :  { %s275_s1 = sadd.f32 -8.0, %s291_s0 }
 0x1b0   :  { %s203_s16 = ssub.f32 64.0, %s291_s0 }
 0x1b1   :  { %p206_p0 = scmp.eq.f32.partialorder %s275_s1, 0.0 }
 0x1b2   :  { %p204_p1 = scmp.eq.f32.partialorder %s203_s16, 0.0 }
 0x1b3   :  { %s389_s1 = smov (%p206_p0, %s275_s1), 1.0 }
 0x1b4   :  { %s391_s16 = smov (%p204_p1, %s203_s16), 1.0  ;;  %v209_v22 = vstv %s389_s1 }
 0x1b5   :  { %306 = vrcp.f32 %v209_v22  ;;  %v213_v23 = vstv %s391_s16  ;;  %s208_s17 = sadd.f32 %s389_s1, %s391_s16 }
 0x1b6   :  { %308 = vrcp.f32 %v213_v23 }
 0x1b7   :  { %310 = vpow2.f32 %v183_v29 }
 0x1bf   :  { %v307_v24 = vpop.eup %306 }
 0x1c0   :  { %v309_v25 = vpop.eup %308  ;;  %292 = vpush %v307_v24 }
 0x1c1   :  { %294 = vpush %v309_v25  ;;  %v311_v30 = vpop.eup %310 }
 0x1c2   :  { %v185_v31 = vadd.f32 1.0, %v311_v30 }
 0x1c4   :  { %312 = vlog2.f32 %v185_v31 }
 0x1ce   :  { %v313_v32 = vpop.eup %312 }
 0x1cf   :  { %v187_v34 = vmul.f32 0.6931472, %v313_v32 }
 0x1d1   :  { %v188_v36 = vadd.f32 %v187_v34, %v180_v33 }
 0x1d3   :  { %v190_v46 = vsub.f32 %v188_v36, %v189_v41 }
 0x1f1   :  { %s293_s18 = spop %292 }
 0x1f2   :  { %s212_s19 = smul.f32 %s293_s18, %s208_s17  ;;  %s295_s20 = spop %294 }
 0x1f3   :  { %s216_s21 = smul.f32 %s295_s20, %s208_s17 }
 0x1f5   :  { %s217_s22 = ssub.f32 %s212_s19, %s216_s21  ;;  %v220_v43 = vstv %s216_s21 }
 0x1f7   :  { %v218_v38 = vstv %s217_s22 }
 0x1f8   :  { %v219_v42 = vmul.f32 %v272_v13, %v218_v38 }
 0x1fa   :  { %v221_v45 = vadd.f32 %v220_v43, %v219_v42 }
 0x1fc   :  { %v227_v47 = vmul.f32 %v221_v45, %v190_v46 }
 0x1fe   :  { %v228_v49 = vsel %vm226_vm5, %v227_v47, 0.0 }
 0x1ff   :  { %v229_v50 = vsel %vm191_vm3, %v228_v49, 0.0 }
 0x200   :  { %230 = vadd.xlane.f32.xlu1 %v229_v50 }
 0x204   :  { %243 = vadd.xlane.f32.xlu1 %v242_v51 }
 0x28d   :  { %v231_v52 = vpop.xlane.xlu1 %230 }
 0x28e   :  { %v232_v53 = vrot.slane %v231_v52, 4 }
 0x290   :  { %v233_v54 = vadd.f32 %v232_v53, %v231_v52 }
 0x291   :  { %v244_v55 = vpop.xlane.xlu1 %243 }
 0x292   :  { %v234_v56 = vrot.slane %v233_v54, 2  ;;  %v245_v57 = vrot.slane %v244_v55, 4 }
 0x294   :  { %v246_v58 = vadd.f32 %v245_v57, %v244_v55  ;;  %v235_v59 = vadd.f32 %v234_v56, %v233_v54 }
 0x296   :  { %v247_v60 = vrot.slane %v246_v58, 2  ;;  %v236_v61 = vrot.slane %v235_v59, 1 }
 0x298   :  { %v248_v62 = vadd.f32 %v247_v60, %v246_v58  ;;  %v237_v63 = vadd.f32 %v236_v61, %v235_v59 }
 0x29a   :  { %296 = vpush %v237_v63  ;;  %v249_v0 = vrot.slane %v248_v62, 1 }
 0x29c   :  { %v250_v1 = vadd.f32 %v249_v0, %v248_v62 }
 0x29e   :  { %298 = vpush %v250_v1 }
 0x2cb   :  { %s297_s2 = spop %296 }
 0x2cc   :  { %s239_s25 = smul.f32 0.017857144, %s297_s2 }
 0x2cf   :  { %s299_s26 = spop %298 }
 0x2d0   :  { %s252_s27 = smul.f32 0.5, %s299_s26 }
 0x2d2   :  { %s253_s28 = sadd.f32 %s252_s27, %s239_s25 }
 0x2d4   :  { %s254_s29 = smul.f32 0.001953125, %s253_s28 }
 0x2d6   :  { %256 = sst [smem:[#allocation2]] %s254_s29 }
 0x2d7   :  { %323 = shalt.err (!%p320_p4)
}
 0x2d8   :  { %s330_s10 = smov [#allocation2]  }
 0x2d9   :  { %264 = dma.smem_to_hbm %s330_s10, 16, %s387_s3, [#allocation3]  }
 0x2da   :  { %324 = dma.done.wait [#allocation3], 16  }
 0x2db   :  { %325 = vsyncadd [#allocation3], 4294967280 }
 0x2dc   :  { %268 = sfence }
 0x2dd   :  { %269 = vsyncpa [#allocation3], 1 }

</bundles_post_ra>
